<compile_context>
chip_gen: v5e
topology: v5e:2x2
jax: 0.10.0
libtpu: 0.0.40
codegen_flags: <defaults>
</compile_context>

<pallas_src>
import jax
import jax.numpy as jnp
from jax.experimental import pallas as pl
from jax.experimental.pallas import tpu as pltpu


def _dot_attn_kernel(inp_ref, h_ref, ctx_ref, score_ref):
    # inp_ref:   (BB, T, D)
    # h_ref:     (BB, D)
    # ctx_ref:   (BB, D)
    # score_ref: (BB, T)   -- lane-dense (T on the lane axis)
    inp = inp_ref[...].astype(jnp.float32)            # (BB, T, D) f32
    h = h_ref[...].astype(jnp.float32)                # (BB, D)    f32

    # raw[b, t] = sum_d inp[b, t, d] * h[b, d]
    # VPU broadcast-multiply + lane reduce over D (no MXU weight reload).
    raw = jnp.sum(inp * h[:, None, :], axis=-1)       # (BB, T) f32

    # Numerically-stable softmax over T (dim=1 of the PyTorch module).
    m = jnp.max(raw, axis=-1, keepdims=True)          # (BB, 1)
    e = jnp.exp(raw - m)                              # (BB, T)
    denom = jnp.sum(e, axis=-1, keepdims=True)        # (BB, 1)
    inv = pl.reciprocal(denom, approx=True)           # EUP slot
    inv = inv * (2.0 - denom * inv)                   # one Newton step -> f32 accuracy
    score = e * inv                                   # (BB, T) f32

    # ctx[b, d] = sum_t score[b, t] * inp[b, t, d]
    # VPU broadcast-multiply + sublane reduce over T.
    ctx = jnp.sum(score[:, :, None] * inp, axis=1)    # (BB, D) f32

    ctx_ref[...] = ctx.astype(ctx_ref.dtype)
    score_ref[...] = score.astype(score_ref.dtype)


def _vmem_capacity_bytes():
    """Per-core VMEM capacity, with a conservative (v7x-sized) fallback."""
    try:
        cap = int(getattr(pltpu.get_tpu_info(), "vmem_capacity_bytes", 0))
        if cap > 0:
            return cap
    except Exception:
        pass
    return 64 * 1024 * 1024


def _pick_batch_block(B, T, D, itemsize, budget_bytes):
    """Batch block size + per-batch-row VMEM byte estimate.

    The estimate counts the lane/sublane padding of each block and the f32
    in-kernel working set (cast copy + broadcast product of the inp tile),
    with x2 for the double-buffered pipeline on the I/O tiles.
    """
    t8 = -(-T // 8) * 8          # sublane-padded T (3-D inp tile)
    t128 = -(-T // 128) * 128    # lane-padded T (2-D score tile)
    d128 = -(-D // 128) * 128    # lane-padded D
    per_b = (2 * itemsize * (t8 * d128 + 2 * d128 + t128)   # pipelined tiles
             + 2 * 4 * t8 * d128)                           # f32 temporaries

    if B < 16:
        # Tiny batch: one full-batch block (block dim == array dim, so no
        # 8-alignment constraint), single grid step.
        return B, per_b

    # Pick an even number (>= 2) of roughly balanced, 8-aligned steps so both
    # v7x TensorCores get work and every generation double-buffers.  Increase
    # the step count until the per-step working set fits the VMEM budget.
    steps = 2
    while True:
        bb = -(-(-(-B // steps)) // 8) * 8               # round_up8(ceil(B/steps))
        if bb * per_b <= budget_bytes or bb <= 8:
            return bb, per_b
        steps += 2


def dot_attn(inp, h):
    """Pallas DotAttn forward.

    Args:
      inp: (B, T, D) float array.
      h:   (B, D) float array.
    Returns:
      (context, score): context is (B, D), score is (B, T, 1), matching the
      PyTorch module's `(score.expand_as(inp).mul(inp).sum(1), score)`.
    """
    B, T, D = inp.shape
    assert h.shape == (B, D)
    itemsize = jnp.dtype(inp.dtype).itemsize

    cap = _vmem_capacity_bytes()
    mib = 1024 * 1024
    budget = max(16 * mib, cap - 40 * mib)          # ~24 MiB v7x, ~88 MiB v5e/v6e
    BB, per_b = _pick_batch_block(B, T, D, itemsize, budget)
    required = BB * per_b
    vmem_limit = int(min(cap - 16 * mib, max(32 * mib, required + 16 * mib)))
    # TODO(synk): if `required` still exceeds per-core VMEM (huge T*D at BB=8),
    # fall back to a flash-style T grid axis with online softmax.

    ctx, score2d = pl.pallas_call(
        _dot_attn_kernel,
        out_shape=(
            jax.ShapeDtypeStruct((B, D), inp.dtype),   # context
            jax.ShapeDtypeStruct((B, T), inp.dtype),   # score, lane-dense
        ),
        grid_spec=pltpu.PrefetchScalarGridSpec(
            num_scalar_prefetch=0,
            grid=(pl.cdiv(B, BB),),                    # ragged last block is fine
            in_specs=[
                pl.BlockSpec((BB, T, D), lambda b: (b, 0, 0)),
                pl.BlockSpec((BB, D), lambda b: (b, 0)),
            ],
            out_specs=[
                pl.BlockSpec((BB, D), lambda b: (b, 0)),
                pl.BlockSpec((BB, T), lambda b: (b, 0)),
            ],
        ),
        compiler_params=pltpu.CompilerParams(
            dimension_semantics=("parallel",),
            vmem_limit_bytes=vmem_limit,
        ),
    )(inp, h)

    # Trailing unit dim only added here to match the module's (B, T, 1) score.
    return ctx, score2d[..., None]


def _reference_dot_attn(inp, h):
    """Pure-JAX f32 reference matching the PyTorch module."""
    inp32 = inp.astype(jnp.float32)
    h32 = h.astype(jnp.float32)
    raw = jnp.einsum("btd,bd->bt", inp32, h32)[..., None]      # (B, T, 1)
    score = jax.nn.softmax(raw, axis=1)                        # (B, T, 1)
    ctx = jnp.sum(score * inp32, axis=1)                       # (B, D)
    return ctx.astype(inp.dtype), score.astype(inp.dtype)


if __name__ == "__main__":
    key = jax.random.PRNGKey(0)
    k1, k2, k3, k4 = jax.random.split(key, 4)

    # Small case (matches the module's typical per-step use).
    B, T, D = 2, 8, 32
    inp = jax.random.normal(k1, (B, T, D), dtype=jnp.float32)
    h = jax.random.normal(k2, (B, D), dtype=jnp.float32)
    ctx, score = dot_attn(inp, h)
    ctx = jax.block_until_ready(ctx)
    score = jax.block_until_ready(score)
    ctx_ref, score_ref = _reference_dot_attn(inp, h)
    assert ctx.shape == (B, D) and score.shape == (B, T, 1)
    assert jnp.allclose(ctx, ctx_ref, atol=1e-5, rtol=1e-5)
    assert jnp.allclose(score, score_ref, atol=1e-5, rtol=1e-5)

    # Larger case exercising the multi-step parallel grid + ragged last block
    # (B not a multiple of BB, no wrapper-side padding).
    B2, T2, D2 = 40, 128, 64
    inp2 = jax.random.normal(k3, (B2, T2, D2), dtype=jnp.float32)
    h2 = jax.random.normal(k4, (B2, D2), dtype=jnp.float32)
    ctx2, score2 = dot_attn(inp2, h2)
    ctx2 = jax.block_until_ready(ctx2)
    score2 = jax.block_until_ready(score2)
    ctx2_ref, score2_ref = _reference_dot_attn(inp2, h2)
    assert ctx2.shape == (B2, D2) and score2.shape == (B2, T2, 1)
    assert jnp.allclose(ctx2, ctx2_ref, atol=1e-4, rtol=1e-4)
    assert jnp.allclose(score2, score2_ref, atol=1e-4, rtol=1e-4)

    print("KERNEL_OK")
</pallas_src>

<mosaic_0001>
module attributes {stable_mosaic.version = 11 : i64} {
  func.func @_dot_attn_kernel(%arg0: i32, %arg1: memref<2x8x32xf32, #tpu.memory_space<vmem>>, %arg2: memref<2x32xf32, #tpu.memory_space<vmem>>, %arg3: memref<2x32xf32, #tpu.memory_space<vmem>>, %arg4: memref<2x8xf32, #tpu.memory_space<vmem>>) attributes {dimension_semantics = [#tpu.dimension_semantics<parallel>], iteration_bounds = array<i64: 1>, scalar_prefetch = 0 : i64, scratch_operands = 0 : i64, tpu.core_type = #tpu.core_type<tc>, window_params = [{transform_indices = @transform_0, window_bounds = array<i64: 2, 8, 32>}, {transform_indices = @transform_1, window_bounds = array<i64: 2, 32>}, {transform_indices = @transform_2, window_bounds = array<i64: 2, 32>}, {transform_indices = @transform_3, window_bounds = array<i64: 2, 8>}]} {
    %c0 = arith.constant 0 : index
    %c0_0 = arith.constant 0 : index
    %c0_1 = arith.constant 0 : index
    %0 = vector.load %arg1[%c0, %c0_0, %c0_1] : memref<2x8x32xf32, #tpu.memory_space<vmem>>, vector<2x8x32xf32>
    %c0_2 = arith.constant 0 : index
    %c0_3 = arith.constant 0 : index
    %1 = vector.load %arg2[%c0_2, %c0_3] : memref<2x32xf32, #tpu.memory_space<vmem>>, vector<2x32xf32>
    %2 = vector.shape_cast %1 : vector<2x32xf32> to vector<2x1x32xf32>
    %3 = vector.broadcast %2 : vector<2x1x32xf32> to vector<2x8x32xf32>
    %4 = arith.mulf %0, %3 : vector<2x8x32xf32>
    %cst = arith.constant dense<0.000000e+00> : vector<2x8xf32>
    %5 = vector.multi_reduction <add>, %4, %cst [2] : vector<2x8x32xf32> to vector<2x8xf32>
    %cst_4 = arith.constant dense<0xFF800000> : vector<2xf32>
    %6 = vector.multi_reduction <maximumf>, %5, %cst_4 [1] : vector<2x8xf32> to vector<2xf32>
    %7 = vector.shape_cast %6 : vector<2xf32> to vector<2x1xf32>
    %8 = vector.broadcast %7 : vector<2x1xf32> to vector<2x8xf32>
    %9 = arith.subf %5, %8 : vector<2x8xf32>
    %10 = math.exp %9 : vector<2x8xf32>
    %cst_5 = arith.constant dense<0.000000e+00> : vector<2xf32>
    %11 = vector.multi_reduction <add>, %10, %cst_5 [1] : vector<2x8xf32> to vector<2xf32>
    %12 = vector.shape_cast %11 : vector<2xf32> to vector<2x1xf32>
    %13 = tpu.reciprocal %12 {approx = true} : vector<2x1xf32> -> vector<2x1xf32>
    %14 = arith.mulf %12, %13 : vector<2x1xf32>
    %cst_6 = arith.constant 2.000000e+00 : f32
    %15 = vector.broadcast %cst_6 : f32 to vector<2x1xf32>
    %16 = arith.subf %15, %14 : vector<2x1xf32>
    %17 = arith.mulf %13, %16 : vector<2x1xf32>
    %18 = vector.broadcast %17 : vector<2x1xf32> to vector<2x8xf32>
    %19 = arith.mulf %10, %18 : vector<2x8xf32>
    %20 = vector.shape_cast %19 : vector<2x8xf32> to vector<2x8x1xf32>
    %21 = vector.broadcast %20 : vector<2x8x1xf32> to vector<2x8x32xf32>
    %22 = arith.mulf %21, %0 : vector<2x8x32xf32>
    %cst_7 = arith.constant dense<0.000000e+00> : vector<2x32xf32>
    %23 = vector.multi_reduction <add>, %22, %cst_7 [1] : vector<2x8x32xf32> to vector<2x32xf32>
    %c0_8 = arith.constant 0 : index
    %c0_9 = arith.constant 0 : index
    %24 = vector.load %arg3[%c0_8, %c0_9] : memref<2x32xf32, #tpu.memory_space<vmem>>, vector<2x32xf32>
    tpu.vector_store %arg3[%c0_8, %c0_9], %23 {strides = array<i32>} : memref<2x32xf32, #tpu.memory_space<vmem>>, vector<2x32xf32>,
    %c0_10 = arith.constant 0 : index
    %c0_11 = arith.constant 0 : index
    %25 = vector.load %arg4[%c0_10, %c0_11] : memref<2x8xf32, #tpu.memory_space<vmem>>, vector<2x8xf32>
    tpu.vector_store %arg4[%c0_10, %c0_11], %19 {strides = array<i32>} : memref<2x8xf32, #tpu.memory_space<vmem>>, vector<2x8xf32>,
    return
  }
  func.func @transform_0(%arg0: i32) -> (i32, i32, i32) {
    %c0_i32 = arith.constant 0 : i32
    %c0_i32_0 = arith.constant 0 : i32
    %c0_i32_1 = arith.constant 0 : i32
    return %arg0, %c0_i32, %c0_i32_0 : i32, i32, i32
  }
  func.func @transform_1(%arg0: i32) -> (i32, i32) {
    %c0_i32 = arith.constant 0 : i32
    %c0_i32_0 = arith.constant 0 : i32
    return %arg0, %c0_i32 : i32, i32
  }
  func.func @transform_2(%arg0: i32) -> (i32, i32) {
    %c0_i32 = arith.constant 0 : i32
    %c0_i32_0 = arith.constant 0 : i32
    return %arg0, %c0_i32 : i32, i32
  }
  func.func @transform_3(%arg0: i32) -> (i32, i32) {
    %c0_i32 = arith.constant 0 : i32
    %c0_i32_0 = arith.constant 0 : i32
    return %arg0, %c0_i32 : i32, i32
  }
}

</mosaic_0001>

<bundles_post_ra>
// kernel: tpu_custom_call.1
= control target key start
LH: loop header
LB: loop body
LE: loop exit
PB: predicated region body
PF: predicated region fallthrough
CT: control target
= control target key end

     0   :  { %9 = vsyncpa [#allocation3], 0  ;;  %s358_s0 = inlined_call_operand.hbm [shape: f32[2,8,32], index: 0, kind: input, shape index: {}]   ;;  %s359_s1 = inlined_call_operand.hbm [shape: f32[2,32], index: 1, kind: input, shape index: {}]   ;;  %s360_s2 = inlined_call_operand.hbm [shape: f32[2,32], index: 2, kind: output, shape index: {0}]   ;;  %s361_s3 = inlined_call_operand.hbm [shape: f32[2,8], index: 3, kind: output, shape index: {1}]  }
   0x1   :  { %10 = vsyncpa [#allocation6], 0 }
   0x2   :  { %11 = vsyncpa [#allocation4], 0 }
   0x3   :  { %12 = vsyncpa [#allocation9], 0  ;;  %s17_s14 = sshll.u32 %s358_s0, 4  ;;  %s304_s15 = smov [#allocation2]   ;;  %s18_s14 = int_to_ptr.hbm [resolvable:$true] %s17_s14 }
   0x4   :  { %s19_s16 = sshll.u32 %s304_s15, 4  ;;  %s31_s19 = sshll.u32 %s359_s1, 4  ;;  %s20_s16 = int_to_ptr.vmem [resolvable:$true] %s19_s16  ;;  %s32_s19 = int_to_ptr.hbm [resolvable:$true] %s31_s19 }
   0x5   :  { %s305_s20 = smov 128   ;;  %s306_s21 = smov 8  }
   0x6   :  { %25 = dma.hbm_to_vmem [thread:$0]  %s18_s14, 256, %s20_s16, [#allocation3], %s305_s20, %s305_s20, %s306_s21  }
   0x7   :  { %s307_s22 = smov [#allocation5]  }
   0x8   :  { %s33_s23 = sshll.u32 %s307_s22, 4  ;;  %s34_s23 = int_to_ptr.vmem [resolvable:$true] %s33_s23 }
   0x9   :  { %36 = dma.hbm_to_vmem [thread:$0]  %s32_s19, 32, %s34_s23, [#allocation6]  }
   0xa   :  { %296 = dma.done.wait [#allocation3], 256  }
   0xb   :  { %297 = vsyncadd [#allocation3], 4294967040 }
   0xc   :  { %298 = dma.done.wait [#allocation6], 32  }
   0xd   :  { %299 = vsyncadd [#allocation6], 4294967264  ;;  %v337_v0 = vld [vmem:[#allocation2] sm:$0xff]  ;;  %v47_v1 = vld [vmem:[#allocation5] sm:$0x3]  ;;  %vm56_vm0 = vcmask 261120   ;;  %v65_v11 = vlaneseq }
   0xe   :  { %v50_v2 = vperm.slane %v47_v1, 0  ;;  %v49_v3 = vrot.slane %v47_v1, 1  ;;  %v46_v6 = vld [vmem:[#allocation2 + $0x8] sm:$0xff]  ;;  %vm69_vm1 = vcmask 1041409   ;;  %vm72_vm2 = vcmask 58368   ;;  %s309_s0 = smov [#allocation8]  }
   0xf   :  { %v66_v12 = vand.u32 127, %v65_v11  ;;  %v308_v18 = vmov 0   ;;  %s166_s1 = sshll.u32 %s309_s0, 4  ;;  %s168_s26 = sshll.u32 %s361_s3, 4  ;;  %vm143_vm3 = vcmask 254976   ;;  %s167_s1 = int_to_ptr.vmem [resolvable:$true] %s166_s1  ;;  %s169_s26 = int_to_ptr.hbm [resolvable:$true] %s168_s26 }
  0x10   :  { %v54_v4 = vmul.f32 %v50_v2, %v337_v0  ;;  %v51_v5 = vperm.slane %v49_v3, 0  ;;  %192 = vset.pattern.permute.xlu2 %v308_v18  ;;  %191 = vset.pattern.permute.xlu1 %v308_v18  ;;  %s310_s3 = smov [#allocation7]   ;;  %s157_s30 = sshll.u32 %s360_s2, 4  ;;  %s158_s30 = int_to_ptr.hbm [resolvable:$true] %s157_s30 }
  0x11   :  { %193 = vset.pattern.permute.xlu0 %v308_v18  ;;  %s155_s27 = sshll.u32 %s310_s3, 4  ;;  %s156_s27 = int_to_ptr.vmem [resolvable:$true] %s155_s27 }
  0x12   :  { %v57_v7 = vsel %vm56_vm0, %v54_v4, 0.0  ;;  %v55_v8 = vmul.f32 %v51_v5, %v46_v6 }
  0x13   :  { %58 = vadd.xlane.f32.xlu0 %v57_v7 }
  0x14   :  { %v60_v9 = vsel %vm56_vm0, %v55_v8, 0.0 }
  0x1b   :  { %61 = vadd.xlane.f32.xlu0 %v60_v9 }
  0x86   :  { %v59_v10 = vpop.xlane.xlu0 %58 }
  0x87   :  { %v67_v14 = vperm.slane %v59_v10, %v66_v12 }
  0x8e   :  { %v62_v13 = vpop.xlane.xlu0 %61 }
  0x8f   :  { %v68_v15 = vperm.slane %v62_v13, %v66_v12 }
  0x91   :  { %v70_v16 = vsel %vm69_vm1, %v68_v15, %v67_v14 }
  0x92   :  { %v73_v17 = vsel %vm72_vm2, %v70_v16, -inf }
  0x93   :  { %74 = vmax.xlane.f32.xlu1 %v73_v17 }
 0x106   :  { %v75_v19 = vpop.xlane.xlu1 %74 }
 0x107   :  { %v77_v20 = vperm.slane %v75_v19, 0  ;;  %v78_v21 = vperm.slane %v75_v19, 1 }
 0x109   :  { %v81_v22 = vsub.f32 %v59_v10, %v77_v20  ;;  %v82_v23 = vsub.f32 %v62_v13, %v78_v21 }
 0x10b   :  { %v83_v24 = vmul.f32 1.442695, %v81_v22  ;;  %v85_v25 = vmul.f32 1.442695, %v82_v23 }
 0x10d   :  { %194 = vpow2.f32 %v83_v24 }
 0x10e   :  { %196 = vpow2.f32 %v85_v25 }
 0x113   :  { %v195_v26 = vpop.eup %194 }
 0x114   :  { %v197_v27 = vpop.eup %196  ;;  %90 = vperm.xlu1 %191, %v195_v26  }
 0x115   :  { %93 = vperm.xlu2 %192, %v197_v27  }
 0x16f   :  { %v94_v28 = vpop.permute.xlu2 %93 }
 0x170   :  { %v96_v30 = vperm.slane %v94_v28, %v66_v12 }
 0x186   :  { %v91_v29 = vpop.permute.xlu1 %90 }
 0x187   :  { %v95_v31 = vperm.slane %v91_v29, %v66_v12 }
 0x189   :  { %v97_v32 = vsel %vm69_vm1, %v96_v30, %v95_v31 }
 0x18a   :  { %v99_v33 = vsel %vm72_vm2, %v97_v32, 0.0 }
 0x18b   :  { %100 = vadd.xlane.f32.xlu2 %v99_v33 }
 0x1fe   :  { %v101_v34 = vpop.xlane.xlu2 %100 }
 0x1ff   :  { %198 = vrcp.f32 %v101_v34 }
 0x205   :  { %v199_v35 = vpop.eup %198 }
 0x206   :  { %v103_v36 = vmul.f32 %v199_v35, %v101_v34 }
 0x208   :  { %v104_v37 = vsub.f32 2.0, %v103_v36 }
 0x20a   :  { %v105_v38 = vmul.f32 %v199_v35, %v104_v37 }
 0x20c   :  { %v107_v39 = vperm.slane %v105_v38, 0  ;;  %v108_v40 = vperm.slane %v105_v38, 1 }
 0x20e   :  { %v112_v41 = vmul.f32 %v197_v27, %v108_v40  ;;  %v111_v42 = vmul.f32 %v195_v26, %v107_v39 }
 0x210   :  { %120 = vperm.xlu1 %191, %v112_v41   ;;  %115 = vperm.xlu0 %193, %v111_v42  }
 0x282   :  { %v121_v43 = vpop.permute.xlu1 %120  ;;  %v116_v44 = vpop.permute.xlu0 %115 }
 0x283   :  { %v124_v45 = vmul.f32 %v121_v43, %v46_v6  ;;  %v146_v46 = vperm.slane %v121_v43, %v66_v12  ;;  %v123_v47 = vmul.f32 %v116_v44, %v337_v0  ;;  %v145_v48 = vperm.slane %v116_v44, %v66_v12 }
 0x285   :  { %v132_v49 = vsel %vm56_vm0, %v124_v45, 0.0  ;;  %v125_v50 = vsel %vm56_vm0, %v123_v47, 0.0  ;;  %v147_v51 = vsel %vm69_vm1, %v146_v46, %v145_v48 }
 0x286   :  { %v133_v52 = vrot.slane %v132_v49, 4  ;;  %v126_v53 = vrot.slane %v125_v50, 4  ;;  %149 = vst.msk [vmem:[#allocation8] sm:$0x3] %vm72_vm2, %v147_v51 }
 0x287   :  { %171 = dma.vmem_to_hbm [thread:$0]  %s167_s1, 32, %s169_s26, [#allocation9]  }
 0x288   :  { %v134_v54 = vadd.f32 %v133_v52, %v132_v49  ;;  %v127_v55 = vadd.f32 %v126_v53, %v125_v50 }
 0x28a   :  { %v135_v56 = vrot.slane %v134_v54, 2  ;;  %v128_v57 = vrot.slane %v127_v55, 2 }
 0x28c   :  { %v136_v58 = vadd.f32 %v135_v56, %v134_v54  ;;  %v129_v59 = vadd.f32 %v128_v57, %v127_v55 }
 0x28e   :  { %v137_v60 = vrot.slane %v136_v58, 1  ;;  %v130_v61 = vrot.slane %v129_v59, 1 }
 0x290   :  { %v138_v62 = vadd.f32 %v137_v60, %v136_v58  ;;  %v131_v63 = vadd.f32 %v130_v61, %v129_v59 }
 0x292   :  { %v141_v0 = vsel %vm69_vm1, %v138_v62, %v131_v63 }
 0x293   :  { %144 = vst.msk [vmem:[#allocation7] sm:$0x3] %vm143_vm3, %v141_v0 }
 0x294   :  { %160 = dma.vmem_to_hbm [thread:$0]  %s156_s27, 32, %s158_s30, [#allocation4]  }
 0x295   :  { %300 = dma.done.wait [#allocation4], 32  }
 0x296   :  { %301 = vsyncadd [#allocation4], 4294967264 }
 0x297   :  { %302 = dma.done.wait [#allocation9], 32  }
 0x298   :  { %303 = vsyncadd [#allocation9], 4294967264 }
 0x299   :  { %180 = vsyncpa [#allocation3], 1 }
 0x29a   :  { %181 = vsyncpa [#allocation6], 1 }
 0x29b   :  { %182 = vsyncpa [#allocation4], 1 }
 0x29c   :  { %183 = vsyncpa [#allocation9], 1 }

</bundles_post_ra>
